<compile_context>
chip_gen: v6e
topology: v6e:2x2x1
jax: 0.10.0
libtpu: 0.0.40
codegen_flags: <defaults>
</compile_context>

<pallas_src>
import functools

import jax
import jax.numpy as jnp
from jax import lax
from jax.experimental import pallas as pl
from jax.experimental.pallas import tpu as pltpu

BN_EPS = 1e-5
LANE = 128
NEG_BIG = -1e9  # bias for padded logit lanes; exp(NEG_BIG - max) == 0


# --------------------------------------------------------------------------
# Kernel
# --------------------------------------------------------------------------
def _mlp_kernel(x_ref, w1_ref, b1_ref, w2_ref, b2_ref, w3_ref, b3_ref, o_ref):
    mm_dtype = w1_ref.dtype  # bf16 (default) or f32; set by prepare_params

    def standardize(h):
        # Training-mode BatchNorm1d core: batch mean / biased batch variance.
        # (gamma/beta were folded into the following FC weights/bias.)
        mu = jnp.mean(h, axis=0, keepdims=True)
        var = jnp.mean((h - mu) * (h - mu), axis=0, keepdims=True)
        return (h - mu) * lax.rsqrt(var + BN_EPS)

    def fc(n, w_ref, b_ref):
        # Row-major [out, in] weights; contract dim 1 of both operands so no
        # physical transpose is ever materialized. f32 accumulation on MXU.
        return lax.dot_general(
            n.astype(mm_dtype), w_ref[...],
            dimension_numbers=(((1,), (1,)), ((), ())),
            preferred_element_type=jnp.float32) + b_ref[...]

    # BN1 -> FC1 -> relu
    h = jnp.maximum(fc(standardize(x_ref[...]), w1_ref, b1_ref), 0.0)
    # BN2 -> FC2 -> relu
    h = jnp.maximum(fc(standardize(h), w2_ref, b2_ref), 0.0)
    # BN3 -> FC3 -> log_softmax (over the lane-dense, 128-wide padded logits)
    z = fc(standardize(h), w3_ref, b3_ref)
    zmax = jnp.max(z, axis=1, keepdims=True)
    zs = z - zmax
    lse = jnp.log(jnp.sum(jnp.exp(zs), axis=1, keepdims=True))
    o_ref[...] = zs - lse


# --------------------------------------------------------------------------
# Parameter preparation (outside the hot path, run once)
# --------------------------------------------------------------------------
def weight_norm(v, g):
    # PyTorch weight_norm default dim=0: per-output-row normalization.
    # v: [out, in], g: [out]  ->  W: [out, in]
    norm = jnp.sqrt(jnp.sum(v * v, axis=1, keepdims=True))
    return v * (g[:, None] / norm)


def prepare_params(params, *, matmul_dtype=jnp.bfloat16):
    """Fold weight-norm + BatchNorm affine into the FC weights and biases.

    BN(h) @ W.T + b == ((h - mu) * inv) @ (W * gamma[None, :]).T + (W @ beta + b)
    so the kernel only needs the standardized activations.
    """
    def fold(v, g, b, bn_gamma, bn_beta):
        w = weight_norm(v, g)                      # [out, in], f32
        w_f = w * bn_gamma[None, :]                # fold gamma into columns
        b_f = w @ bn_beta + b                      # fold beta into bias
        return w_f, b_f

    w1, b1 = fold(params["v1"], params["g1"], params["b1"],
                  params["bn1_gamma"], params["bn1_beta"])
    w2, b2 = fold(params["v2"], params["g2"], params["b2"],
                  params["bn2_gamma"], params["bn2_beta"])
    w3, b3 = fold(params["v3"], params["g3"], params["b3"],
                  params["bn3_gamma"], params["bn3_beta"])

    # Lane-dense output: pad FC3's out-dim up to a multiple of 128. Padded
    # weight rows are zero; padded bias entries are very negative so they
    # never win the max and contribute exp(...) == 0 to the LSE.
    OL, H2 = w3.shape
    OL_pad = max(LANE, ((OL + LANE - 1) // LANE) * LANE)
    w3p = jnp.zeros((OL_pad, H2), w3.dtype).at[:OL].set(w3)
    b3p = jnp.full((OL_pad,), NEG_BIG, jnp.float32).at[:OL].set(b3)

    return {
        "w1": w1.astype(matmul_dtype), "b1": b1[None, :].astype(jnp.float32),
        "w2": w2.astype(matmul_dtype), "b2": b2[None, :].astype(jnp.float32),
        "w3": w3p.astype(matmul_dtype), "b3": b3p[None, :].astype(jnp.float32),
        "OL": int(OL),
    }


# --------------------------------------------------------------------------
# Forward wrapper
# --------------------------------------------------------------------------
@functools.partial(jax.jit, static_argnames=("out_features",))
def _mlp_forward_padded(x, w1, b1, w2, b2, w3, b3, *, out_features):
    B = x.shape[0]
    OL_pad = w3.shape[0]
    args = (x, w1, b1, w2, b2, w3, b3)

    flops = 2 * B * (w1.shape[1] * w1.shape[0]
                     + w2.shape[1] * w2.shape[0]
                     + w3.shape[1] * OL_pad)
    bytes_accessed = sum(int(a.size) * a.dtype.itemsize for a in args) \
        + B * OL_pad * 4
    transcendentals = B * OL_pad + B + x.shape[1] + w1.shape[0] + w2.shape[0]

    vmem = pl.BlockSpec(memory_space=pltpu.MemorySpace.VMEM)
    out = pl.pallas_call(
        _mlp_kernel,
        out_shape=jax.ShapeDtypeStruct((B, OL_pad), jnp.float32),
        in_specs=[vmem] * len(args),
        out_specs=vmem,
        cost_estimate=pl.CostEstimate(
            flops=flops,
            transcendentals=transcendentals,
            bytes_accessed=bytes_accessed),
    )(*args)
    return out[:, :out_features]


def mlp_forward(x, prepared):
    """x: [B, IL] float32, prepared: output of prepare_params."""
    return _mlp_forward_padded(
        x,
        prepared["w1"], prepared["b1"],
        prepared["w2"], prepared["b2"],
        prepared["w3"], prepared["b3"],
        out_features=prepared["OL"])


# --------------------------------------------------------------------------
# Plain-JAX reference (PyTorch training-mode semantics) for validation
# --------------------------------------------------------------------------
def reference_forward(x, params):
    def bn(h, gamma, beta):
        mu = jnp.mean(h, axis=0, keepdims=True)
        var = jnp.mean((h - mu) ** 2, axis=0, keepdims=True)
        return (h - mu) / jnp.sqrt(var + BN_EPS) * gamma + beta

    w1 = weight_norm(params["v1"], params["g1"])
    w2 = weight_norm(params["v2"], params["g2"])
    w3 = weight_norm(params["v3"], params["g3"])

    h = bn(x, params["bn1_gamma"], params["bn1_beta"])
    h = jnp.maximum(h @ w1.T + params["b1"], 0.0)
    h = bn(h, params["bn2_gamma"], params["bn2_beta"])
    h = jnp.maximum(h @ w2.T + params["b2"], 0.0)
    h = bn(h, params["bn3_gamma"], params["bn3_beta"])
    z = h @ w3.T + params["b3"]
    return jax.nn.log_softmax(z, axis=1)


def init_params(key, IL, HL, OL):
    keys = jax.random.split(key, 15)
    H1, H2 = HL
    return {
        # FC weight-norm parameterization: v [out, in], g [out], bias [out]
        "v1": jax.random.normal(keys[0], (H1, IL), jnp.float32) * 0.2,
        "g1": 1.0 + 0.1 * jax.random.normal(keys[1], (H1,), jnp.float32),
        "b1": 0.1 * jax.random.normal(keys[2], (H1,), jnp.float32),
        "v2": jax.random.normal(keys[3], (H2, H1), jnp.float32) * 0.2,
        "g2": 1.0 + 0.1 * jax.random.normal(keys[4], (H2,), jnp.float32),
        "b2": 0.1 * jax.random.normal(keys[5], (H2,), jnp.float32),
        "v3": jax.random.normal(keys[6], (OL, H2), jnp.float32) * 0.2,
        "g3": 1.0 + 0.1 * jax.random.normal(keys[7], (OL,), jnp.float32),
        "b3": 0.1 * jax.random.normal(keys[8], (OL,), jnp.float32),
        # BatchNorm affine params (independent keys for gamma and beta)
        "bn1_gamma": 1.0 + 0.05 * jax.random.normal(keys[9], (IL,), jnp.float32),
        "bn1_beta": 0.05 * jax.random.normal(keys[10], (IL,), jnp.float32),
        "bn2_gamma": 1.0 + 0.05 * jax.random.normal(keys[11], (H1,), jnp.float32),
        "bn2_beta": 0.05 * jax.random.normal(keys[12], (H1,), jnp.float32),
        "bn3_gamma": 1.0 + 0.05 * jax.random.normal(keys[13], (H2,), jnp.float32),
        "bn3_beta": 0.05 * jax.random.normal(keys[14], (H2,), jnp.float32),
    }


if __name__ == "__main__":
    # TODO(synk): dropout (use_dp=True path) and eval-mode running-stats BN are
    # not implemented; this covers the deterministic use_dp=None forward branch.
    B, IL, HL, OL = 8, 16, (32, 32), 8

    key = jax.random.PRNGKey(0)
    kx, kp = jax.random.split(key)
    x = jax.random.normal(kx, (B, IL), jnp.float32)
    params = init_params(kp, IL, HL, OL)

    ref = reference_forward(x, params)

    # Strict f32 parity check of the fused kernel vs the plain-JAX reference.
    prep_f32 = prepare_params(params, matmul_dtype=jnp.float32)
    out_f32 = jax.block_until_ready(mlp_forward(x, prep_f32))
    assert out_f32.shape == (B, OL)
    assert jnp.allclose(out_f32, ref, atol=1e-4, rtol=1e-4), "f32 mismatch vs reference"

    # Default bf16-matmul path (native MXU dtype on v6e/v7x, f32 accumulate,
    # all BN/softmax math in f32). Loose tolerance accounts for bf16 operand
    # rounding only.
    prep_bf16 = prepare_params(params, matmul_dtype=jnp.bfloat16)
    out_bf16 = jax.block_until_ready(mlp_forward(x, prep_bf16))
    assert out_bf16.shape == (B, OL)
    assert jnp.allclose(out_bf16, ref, atol=1e-1, rtol=1e-1), "bf16 mismatch vs reference"

    print("KERNEL_OK")
</pallas_src>

<mosaic_0001>
module attributes {stable_mosaic.version = 11 : i64} {
  func.func @_mlp_kernel(%arg0: memref<8x16xf32, #tpu.memory_space<vmem>>, %arg1: memref<32x16xf32, #tpu.memory_space<vmem>>, %arg2: memref<1x32xf32, #tpu.memory_space<vmem>>, %arg3: memref<32x32xf32, #tpu.memory_space<vmem>>, %arg4: memref<1x32xf32, #tpu.memory_space<vmem>>, %arg5: memref<128x32xf32, #tpu.memory_space<vmem>>, %arg6: memref<1x128xf32, #tpu.memory_space<vmem>>, %arg7: memref<8x128xf32, #tpu.memory_space<vmem>>) attributes {dimension_semantics = [], scalar_prefetch = 0 : i64, scratch_operands = 0 : i64, tpu.core_type = #tpu.core_type<tc>} {
    %c0 = arith.constant 0 : index
    %c0_0 = arith.constant 0 : index
    %0 = vector.load %arg0[%c0, %c0_0] : memref<8x16xf32, #tpu.memory_space<vmem>>, vector<8x16xf32>
    %cst = arith.constant dense<0.000000e+00> : vector<16xf32>
    %1 = vector.multi_reduction <add>, %0, %cst [0] : vector<8x16xf32> to vector<16xf32>
    %2 = vector.shape_cast %1 : vector<16xf32> to vector<1x16xf32>
    %cst_1 = arith.constant 8.000000e+00 : f32
    %3 = vector.broadcast %cst_1 : f32 to vector<1x16xf32>
    %4 = arith.divf %2, %3 : vector<1x16xf32>
    %5 = vector.broadcast %4 : vector<1x16xf32> to vector<8x16xf32>
    %6 = arith.subf %0, %5 : vector<8x16xf32>
    %7 = vector.broadcast %4 : vector<1x16xf32> to vector<8x16xf32>
    %8 = arith.subf %0, %7 : vector<8x16xf32>
    %9 = arith.mulf %6, %8 : vector<8x16xf32>
    %cst_2 = arith.constant dense<0.000000e+00> : vector<16xf32>
    %10 = vector.multi_reduction <add>, %9, %cst_2 [0] : vector<8x16xf32> to vector<16xf32>
    %11 = vector.shape_cast %10 : vector<16xf32> to vector<1x16xf32>
    %cst_3 = arith.constant 8.000000e+00 : f32
    %12 = vector.broadcast %cst_3 : f32 to vector<1x16xf32>
    %13 = arith.divf %11, %12 : vector<1x16xf32>
    %14 = vector.broadcast %4 : vector<1x16xf32> to vector<8x16xf32>
    %15 = arith.subf %0, %14 : vector<8x16xf32>
    %cst_4 = arith.constant 9.99999974E-6 : f32
    %16 = vector.broadcast %cst_4 : f32 to vector<1x16xf32>
    %17 = arith.addf %13, %16 : vector<1x16xf32>
    %18 = math.rsqrt %17 : vector<1x16xf32>
    %19 = vector.broadcast %18 : vector<1x16xf32> to vector<8x16xf32>
    %20 = arith.mulf %15, %19 : vector<8x16xf32>
    %c0_5 = arith.constant 0 : index
    %c0_6 = arith.constant 0 : index
    %21 = vector.load %arg1[%c0_5, %c0_6] : memref<32x16xf32, #tpu.memory_space<vmem>>, vector<32x16xf32>
    %cst_7 = arith.constant dense<0.000000e+00> : vector<8x32xf32>
    %22 = tpu.matmul %20, %21, %cst_7 {dimension_numbers = #tpu.dot_dimension_numbers<[1], [1], [0], [0], [0, 0, 1, 0], [], []>} : vector<8x16xf32>, vector<32x16xf32>, vector<8x32xf32> -> vector<8x32xf32>
    %c0_8 = arith.constant 0 : index
    %c0_9 = arith.constant 0 : index
    %23 = vector.load %arg2[%c0_8, %c0_9] : memref<1x32xf32, #tpu.memory_space<vmem>>, vector<1x32xf32>
    %24 = vector.broadcast %23 : vector<1x32xf32> to vector<8x32xf32>
    %25 = arith.addf %22, %24 : vector<8x32xf32>
    %cst_10 = arith.constant 0.000000e+00 : f32
    %26 = vector.broadcast %cst_10 : f32 to vector<8x32xf32>
    %27 = arith.maximumf %25, %26 : vector<8x32xf32>
    %cst_11 = arith.constant dense<0.000000e+00> : vector<32xf32>
    %28 = vector.multi_reduction <add>, %27, %cst_11 [0] : vector<8x32xf32> to vector<32xf32>
    %29 = vector.shape_cast %28 : vector<32xf32> to vector<1x32xf32>
    %cst_12 = arith.constant 8.000000e+00 : f32
    %30 = vector.broadcast %cst_12 : f32 to vector<1x32xf32>
    %31 = arith.divf %29, %30 : vector<1x32xf32>
    %32 = vector.broadcast %31 : vector<1x32xf32> to vector<8x32xf32>
    %33 = arith.subf %27, %32 : vector<8x32xf32>
    %34 = vector.broadcast %31 : vector<1x32xf32> to vector<8x32xf32>
    %35 = arith.subf %27, %34 : vector<8x32xf32>
    %36 = arith.mulf %33, %35 : vector<8x32xf32>
    %cst_13 = arith.constant dense<0.000000e+00> : vector<32xf32>
    %37 = vector.multi_reduction <add>, %36, %cst_13 [0] : vector<8x32xf32> to vector<32xf32>
    %38 = vector.shape_cast %37 : vector<32xf32> to vector<1x32xf32>
    %cst_14 = arith.constant 8.000000e+00 : f32
    %39 = vector.broadcast %cst_14 : f32 to vector<1x32xf32>
    %40 = arith.divf %38, %39 : vector<1x32xf32>
    %41 = vector.broadcast %31 : vector<1x32xf32> to vector<8x32xf32>
    %42 = arith.subf %27, %41 : vector<8x32xf32>
    %cst_15 = arith.constant 9.99999974E-6 : f32
    %43 = vector.broadcast %cst_15 : f32 to vector<1x32xf32>
    %44 = arith.addf %40, %43 : vector<1x32xf32>
    %45 = math.rsqrt %44 : vector<1x32xf32>
    %46 = vector.broadcast %45 : vector<1x32xf32> to vector<8x32xf32>
    %47 = arith.mulf %42, %46 : vector<8x32xf32>
    %c0_16 = arith.constant 0 : index
    %c0_17 = arith.constant 0 : index
    %48 = vector.load %arg3[%c0_16, %c0_17] : memref<32x32xf32, #tpu.memory_space<vmem>>, vector<32x32xf32>
    %cst_18 = arith.constant dense<0.000000e+00> : vector<8x32xf32>
    %49 = tpu.matmul %47, %48, %cst_18 {dimension_numbers = #tpu.dot_dimension_numbers<[1], [1], [0], [0], [0, 0, 1, 0], [], []>} : vector<8x32xf32>, vector<32x32xf32>, vector<8x32xf32> -> vector<8x32xf32>
    %c0_19 = arith.constant 0 : index
    %c0_20 = arith.constant 0 : index
    %50 = vector.load %arg4[%c0_19, %c0_20] : memref<1x32xf32, #tpu.memory_space<vmem>>, vector<1x32xf32>
    %51 = vector.broadcast %50 : vector<1x32xf32> to vector<8x32xf32>
    %52 = arith.addf %49, %51 : vector<8x32xf32>
    %cst_21 = arith.constant 0.000000e+00 : f32
    %53 = vector.broadcast %cst_21 : f32 to vector<8x32xf32>
    %54 = arith.maximumf %52, %53 : vector<8x32xf32>
    %cst_22 = arith.constant dense<0.000000e+00> : vector<32xf32>
    %55 = vector.multi_reduction <add>, %54, %cst_22 [0] : vector<8x32xf32> to vector<32xf32>
    %56 = vector.shape_cast %55 : vector<32xf32> to vector<1x32xf32>
    %cst_23 = arith.constant 8.000000e+00 : f32
    %57 = vector.broadcast %cst_23 : f32 to vector<1x32xf32>
    %58 = arith.divf %56, %57 : vector<1x32xf32>
    %59 = vector.broadcast %58 : vector<1x32xf32> to vector<8x32xf32>
    %60 = arith.subf %54, %59 : vector<8x32xf32>
    %61 = vector.broadcast %58 : vector<1x32xf32> to vector<8x32xf32>
    %62 = arith.subf %54, %61 : vector<8x32xf32>
    %63 = arith.mulf %60, %62 : vector<8x32xf32>
    %cst_24 = arith.constant dense<0.000000e+00> : vector<32xf32>
    %64 = vector.multi_reduction <add>, %63, %cst_24 [0] : vector<8x32xf32> to vector<32xf32>
    %65 = vector.shape_cast %64 : vector<32xf32> to vector<1x32xf32>
    %cst_25 = arith.constant 8.000000e+00 : f32
    %66 = vector.broadcast %cst_25 : f32 to vector<1x32xf32>
    %67 = arith.divf %65, %66 : vector<1x32xf32>
    %68 = vector.broadcast %58 : vector<1x32xf32> to vector<8x32xf32>
    %69 = arith.subf %54, %68 : vector<8x32xf32>
    %cst_26 = arith.constant 9.99999974E-6 : f32
    %70 = vector.broadcast %cst_26 : f32 to vector<1x32xf32>
    %71 = arith.addf %67, %70 : vector<1x32xf32>
    %72 = math.rsqrt %71 : vector<1x32xf32>
    %73 = vector.broadcast %72 : vector<1x32xf32> to vector<8x32xf32>
    %74 = arith.mulf %69, %73 : vector<8x32xf32>
    %c0_27 = arith.constant 0 : index
    %c0_28 = arith.constant 0 : index
    %75 = vector.load %arg5[%c0_27, %c0_28] : memref<128x32xf32, #tpu.memory_space<vmem>>, vector<128x32xf32>
    %cst_29 = arith.constant dense<0.000000e+00> : vector<8x128xf32>
    %76 = tpu.matmul %74, %75, %cst_29 {dimension_numbers = #tpu.dot_dimension_numbers<[1], [1], [0], [0], [0, 0, 1, 0], [], []>} : vector<8x32xf32>, vector<128x32xf32>, vector<8x128xf32> -> vector<8x128xf32>
    %c0_30 = arith.constant 0 : index
    %c0_31 = arith.constant 0 : index
    %77 = vector.load %arg6[%c0_30, %c0_31] : memref<1x128xf32, #tpu.memory_space<vmem>>, vector<1x128xf32>
    %78 = vector.broadcast %77 : vector<1x128xf32> to vector<8x128xf32>
    %79 = arith.addf %76, %78 : vector<8x128xf32>
    %cst_32 = arith.constant dense<0xFF800000> : vector<8xf32>
    %80 = vector.multi_reduction <maximumf>, %79, %cst_32 [1] : vector<8x128xf32> to vector<8xf32>
    %81 = vector.shape_cast %80 : vector<8xf32> to vector<8x1xf32>
    %82 = vector.broadcast %81 : vector<8x1xf32> to vector<8x128xf32>
    %83 = arith.subf %79, %82 : vector<8x128xf32>
    %84 = math.exp %83 : vector<8x128xf32>
    %cst_33 = arith.constant dense<0.000000e+00> : vector<8xf32>
    %85 = vector.multi_reduction <add>, %84, %cst_33 [1] : vector<8x128xf32> to vector<8xf32>
    %86 = vector.shape_cast %85 : vector<8xf32> to vector<8x1xf32>
    %87 = math.log %86 : vector<8x1xf32>
    %88 = vector.broadcast %87 : vector<8x1xf32> to vector<8x128xf32>
    %89 = arith.subf %83, %88 : vector<8x128xf32>
    %c0_34 = arith.constant 0 : index
    %c0_35 = arith.constant 0 : index
    %90 = vector.load %arg7[%c0_34, %c0_35] : memref<8x128xf32, #tpu.memory_space<vmem>>, vector<8x128xf32>
    tpu.vector_store %arg7[%c0_34, %c0_35], %89 {strides = array<i32>} : memref<8x128xf32, #tpu.memory_space<vmem>>, vector<8x128xf32>,
    return
  }
}

</mosaic_0001>

<bundles_post_ra>
// kernel: _mlp_forward_padded.1
= control target key start
LH: loop header
LB: loop body
LE: loop exit
PB: predicated region body
PF: predicated region fallthrough
CT: control target
= control target key end

     0   :  { %vm28_vm0 = vcmask 130048   ;;  %v606_v1 = vmov 0.0   ;;  %vm607_vm1 = vmmov 0   ;;  %s799_s0 = inlined_call_operand.vmem [shape: f32[8,16], index: 0, kind: input, shape index: {}]   ;;  %s800_s1 = inlined_call_operand.vmem [shape: f32[32,16], index: 1, kind: input, shape index: {}]   ;;  %s801_s2 = inlined_call_operand.vmem [shape: f32[1,32], index: 2, kind: input, shape index: {}]   ;;  %s802_s3 = inlined_call_operand.vmem [shape: f32[32,32], index: 3, kind: input, shape index: {}]   ;;  %s803_s4 = inlined_call_operand.vmem [shape: f32[1,32], index: 4, kind: input, shape index: {}]   ;;  %s804_s5 = inlined_call_operand.vmem [shape: f32[128,32], index: 5, kind: input, shape index: {}]   ;;  %s805_s6 = inlined_call_operand.vmem [shape: f32[1,128], index: 6, kind: input, shape index: {}]   ;;  %s806_s7 = inlined_call_operand.hbm [shape: f32[8,128], index: 7, kind: output, shape index: {}]  }
   0x1   :  { %v54_v0 = vld [vmem:[%s800_s1 + $0x18] sm:$0xff]  ;;  %514 = vmatprep.subr.mxu1 %v606_v1  ;;  %522 = vmatprep.mubr.msk.f32.mxu1 %vm607_vm1, %v606_v1  ;;  %v27_v2 = vld [vmem:[%s799_s0] sm:$0xff] }
   0x2   :  { %515 = vmatpush3.xpose.msk.msra.mxu1 %vm28_vm0, %v54_v0  ;;  %v29_v3 = vsel %vm28_vm0, %v27_v2, 0.0  ;;  %536 = vmatprep.subr.mxu0 %v606_v1 }
   0x3   :  { %12 = vsyncpa [#allocation3], 0  ;;  %516 = vmatprep.subr.mxu1 %v606_v1  ;;  %v53_v4 = vld [vmem:[%s800_s1 + $0x10] sm:$0xff]  ;;  %v30_v5 = vrot.slane %v29_v3, 4  ;;  %568 = vmatprep.mubr.msk.f32.mxu0 %vm607_vm1, %v606_v1  ;;  %v52_v7 = vld [vmem:[%s800_s1 + $0x8] sm:$0xff]  ;;  %vm148_vm2 = vcmask 261120  }
   0x4   :  { %v51_v10 = vld [vmem:[%s800_s1] sm:$0xff]  ;;  %v173_v27 = vld [vmem:[%s802_s3 + $0x18] sm:$0xff]  ;;  %v172_v28 = vld [vmem:[%s802_s3 + $0x10] sm:$0xff]  ;;  %s608_s24 = smov [#allocation2]  }
   0x5   :  { %v31_v6 = vadd.f32 %v30_v5, %v29_v3  ;;  %v171_v29 = vld [vmem:[%s802_s3 + $0x8] sm:$0xff]  ;;  %v170_v30 = vld [vmem:[%s802_s3] sm:$0xff]  ;;  %v303_v31 = vld [vmem:[%s804_s5 + $0x78] sm:$0xff]  ;;  %s449_s25 = sshll.u32 %s608_s24, 4  ;;  %s450_s25 = int_to_ptr.vmem [resolvable:$true] %s449_s25 }
   0x6   :  { %517 = vmatpush3.xpose.msk.msra.mxu1 %vm28_vm0, %v53_v4  ;;  %537 = vmatpush3.xpose.msk.msra.mxu0 %vm148_vm2, %v303_v31  ;;  %v302_v32 = vld [vmem:[%s804_s5 + $0x70] sm:$0xff]  ;;  %v457_v33 = vld [vmem:[%s801_s2] ss:$0 sm:$0xff]  ;;  %v301_v59 = vld [vmem:[%s804_s5 + $0x68] sm:$0xff]  ;;  %p589_p1 = scmp.lt.s32.totalorder %s450_s25, %s450_s25 }
   0x7   :  { %518 = vmatprep.subr.mxu1 %v606_v1  ;;  %v32_v8 = vrot.slane %v31_v6, 2  ;;  %538 = vmatprep.subr.mxu0 %v606_v1  ;;  %v300_v60 = vld [vmem:[%s804_s5 + $0x60] sm:$0xff]  ;;  %v299_v61 = vld [vmem:[%s804_s5 + $0x58] sm:$0xff]  ;;  %v298_v62 = vld [vmem:[%s804_s5 + $0x50] sm:$0xff] }
   0x8   :  { %v297_v63 = vld [vmem:[%s804_s5 + $0x48] sm:$0xff]  ;;  %v296_v0 = vld [vmem:[%s804_s5 + $0x40] sm:$0xff]  ;;  %v294_v3 = vld [vmem:[%s804_s5 + $0x30] sm:$0xff] }
   0x9   :  { %v33_v9 = vadd.f32 %v32_v8, %v31_v6  ;;  %v293_v4 = vld [vmem:[%s804_s5 + $0x28] sm:$0xff]  ;;  %v292_v5 = vld [vmem:[%s804_s5 + $0x20] sm:$0xff]  ;;  %v291_v6 = vld [vmem:[%s804_s5 + $0x18] sm:$0xff] }
   0xa   :  { %519 = vmatpush3.xpose.msk.msra.mxu1 %vm28_vm0, %v52_v7  ;;  %539 = vmatpush3.xpose.msk.msra.mxu0 %vm148_vm2, %v302_v32  ;;  %v290_v7 = vld [vmem:[%s804_s5 + $0x10] sm:$0xff]  ;;  %v289_v8 = vld [vmem:[%s804_s5 + $0x8] sm:$0xff] }
   0xb   :  { %520 = vmatprep.subr.mxu1 %v606_v1  ;;  %v34_v11 = vrot.slane %v33_v9, 1  ;;  %540 = vmatprep.subr.mxu0 %v606_v1 }
   0xd   :  { %v35_v12 = vadd.f32 %v34_v11, %v33_v9  ;;  %v288_v9 = vld [vmem:[%s804_s5] sm:$0xff] }
   0xe   :  { %521 = vmatpush3.xpose.msk.msra.mxu1 %vm28_vm0, %v51_v10  ;;  %541 = vmatpush3.xpose.msk.msra.mxu0 %vm148_vm2, %v301_v59  ;;  %v463_v10 = vld [vmem:[%s803_s4] ss:$0 sm:$0xff] }
   0xf   :  { %v37_v13 = vmul.f32 0.125, %v35_v12  ;;  %525 = vmatprep.subr.mxu1 %v606_v1  ;;  %542 = vmatprep.subr.mxu0 %v606_v1 }
  0x11   :  { %v38_v14 = vsub.f32 %v27_v2, %v37_v13  ;;  %v295_v2 = vld [vmem:[%s804_s5 + $0x38] sm:$0xff] }
  0x12   :  { %543 = vmatpush3.xpose.msk.msra.mxu0 %vm148_vm2, %v300_v60 }
  0x13   :  { %v39_v15 = vmul.f32 %v38_v14, %v38_v14  ;;  %544 = vmatprep.subr.mxu0 %v606_v1 }
  0x15   :  { %v40_v16 = vsel %vm28_vm0, %v39_v15, 0.0 }
  0x16   :  { %v41_v17 = vrot.slane %v40_v16, 4  ;;  %545 = vmatpush3.xpose.msk.msra.mxu0 %vm148_vm2, %v299_v61 }
  0x17   :  { %546 = vmatprep.subr.mxu0 %v606_v1 }
  0x18   :  { %v42_v18 = vadd.f32 %v41_v17, %v40_v16 }
  0x1a   :  { %v43_v19 = vrot.slane %v42_v18, 2  ;;  %547 = vmatpush3.xpose.msk.msra.mxu0 %vm148_vm2, %v298_v62 }
  0x1b   :  { %548 = vmatprep.subr.mxu0 %v606_v1 }
  0x1c   :  { %v44_v20 = vadd.f32 %v43_v19, %v42_v18 }
  0x1e   :  { %v45_v21 = vrot.slane %v44_v20, 1  ;;  %549 = vmatpush3.xpose.msk.msra.mxu0 %vm148_vm2, %v297_v63 }
  0x1f   :  { %550 = vmatprep.subr.mxu0 %v606_v1 }
  0x20   :  { %v46_v22 = vadd.f32 %v45_v21, %v44_v20 }
  0x22   :  { %v47_v23 = vmul.f32 0.125, %v46_v22  ;;  %551 = vmatpush3.xpose.msk.msra.mxu0 %vm148_vm2, %v296_v0 }
  0x23   :  { %552 = vmatprep.subr.mxu0 %v606_v1 }
  0x24   :  { %v48_v24 = vadd.f32 1e-05, %v47_v23 }
  0x26   :  { %574 = vrsqrt.f32 %v48_v24  ;;  %553 = vmatpush3.xpose.msk.msra.mxu0 %vm148_vm2, %v295_v2 }
  0x27   :  { %554 = vmatprep.subr.mxu0 %v606_v1 }
  0x2a   :  { %555 = vmatpush3.xpose.msk.msra.mxu0 %vm148_vm2, %v294_v3 }
  0x2b   :  { %556 = vmatprep.subr.mxu0 %v606_v1 }
  0x2e   :  { %557 = vmatpush3.xpose.msk.msra.mxu0 %vm148_vm2, %v293_v4 }
  0x2f   :  { %558 = vmatprep.subr.mxu0 %v606_v1 }
  0x32   :  { %559 = vmatpush3.xpose.msk.msra.mxu0 %vm148_vm2, %v292_v5 }
  0x33   :  { %v575_v25 = vpop.eup %574  ;;  %560 = vmatprep.subr.mxu0 %v606_v1 }
  0x34   :  { %v50_v26 = vmul.f32 %v575_v25, %v38_v14 }
  0x36   :  { %523 = vmatmul.mubr.msk.f32.vlgmr.msra.gmra.mxu1 %vm28_vm0, %v50_v26  ;;  %561 = vmatpush3.xpose.msk.msra.mxu0 %vm148_vm2, %v291_v6 }
  0x37   :  { %533 = vmatprep.mubr.msk.f32.mxu1 %vm607_vm1, %v606_v1  ;;  %526 = vmatpush3.xpose.msk.msra.mxu1 %vm148_vm2, %v173_v27 }
  0x38   :  { %527 = vmatprep.subr.mxu1 %v606_v1  ;;  %562 = vmatprep.subr.mxu0 %v606_v1 }
  0x3a   :  { %563 = vmatpush3.xpose.msk.msra.mxu0 %vm148_vm2, %v290_v7 }
  0x3b   :  { %528 = vmatpush3.xpose.msk.msra.mxu1 %vm148_vm2, %v172_v28  ;;  %564 = vmatprep.subr.mxu0 %v606_v1 }
  0x3c   :  { %529 = vmatprep.subr.mxu1 %v606_v1 }
  0x3e   :  { %565 = vmatpush3.xpose.msk.msra.mxu0 %vm148_vm2, %v289_v8 }
  0x3f   :  { %530 = vmatpush3.xpose.msk.msra.mxu1 %vm148_vm2, %v171_v29  ;;  %566 = vmatprep.subr.mxu0 %v606_v1 }
  0x40   :  { %531 = vmatprep.subr.mxu1 %v606_v1 }
  0x42   :  { %567 = vmatpush3.xpose.msk.msra.mxu0 %vm148_vm2, %v288_v9 }
  0x43   :  { %532 = vmatpush3.xpose.msk.msra.mxu1 %vm148_vm2, %v170_v30 }
  0xf6   :  { %v143_v34 = vpop.f32.mrf.mxu1 }
  0xf7   :  { %v144_v35 = vadd.f32 %v457_v33, %v143_v34 }
  0xf8   :  { %v524_v36 = vpop.f32.mrf.mxu1 }
  0xf9   :  { %v147_v37 = vmax.f32 %v144_v35, 0.0  ;;  %v469_v35 = vld [vmem:[%s805_s6] ss:$0 sm:$0xff]  ;;  %s584_s6 = scalar_lea.vmem %s450_s25, 128 }
  0xfa   :  { %p585_p0 = scmp.ne.s32.totalorder %s450_s25, %s584_s6  ;;  %p590_p2 = scmp.lt.s32.totalorder %s584_s6, %s584_s6 }
  0xfb   :  { %v149_v38 = vsel %vm148_vm2, %v147_v37, 0.0 }
  0xfc   :  { %v150_v39 = vrot.slane %v149_v38, 4  ;;  %p591_p3 = por %p590_p2, %p589_p1 }
  0xfe   :  { %v151_v40 = vadd.f32 %v150_v39, %v149_v38  ;;  %p592_p4 = pnand %p591_p3, %p585_p0 }
 0x100   :  { %v152_v41 = vrot.slane %v151_v40, 2 }
 0x102   :  { %v153_v42 = vadd.f32 %v152_v41, %v151_v40 }
 0x104   :  { %v154_v43 = vrot.slane %v153_v42, 1 }
 0x106   :  { %v155_v44 = vadd.f32 %v154_v43, %v153_v42 }
 0x108   :  { %v156_v45 = vmul.f32 0.125, %v155_v44 }
 0x10a   :  { %v157_v46 = vsub.f32 %v147_v37, %v156_v45 }
 0x10c   :  { %v158_v47 = vmul.f32 %v157_v46, %v157_v46 }
 0x10e   :  { %v159_v48 = vsel %vm148_vm2, %v158_v47, 0.0 }
 0x10f   :  { %v160_v49 = vrot.slane %v159_v48, 4 }
 0x111   :  { %v161_v50 = vadd.f32 %v160_v49, %v159_v48 }
 0x113   :  { %v162_v51 = vrot.slane %v161_v50, 2 }
 0x115   :  { %v163_v52 = vadd.f32 %v162_v51, %v161_v50 }
 0x117   :  { %v164_v53 = vrot.slane %v163_v52, 1 }
 0x119   :  { %v165_v54 = vadd.f32 %v164_v53, %v163_v52 }
 0x11b   :  { %v166_v55 = vmul.f32 0.125, %v165_v54 }
 0x11d   :  { %v167_v56 = vadd.f32 1e-05, %v166_v55 }
 0x11f   :  { %576 = vrsqrt.f32 %v167_v56 }
 0x12c   :  { %v577_v57 = vpop.eup %576 }
 0x12d   :  { %v169_v58 = vmul.f32 %v577_v57, %v157_v46 }
 0x12f   :  { %534 = vmatmul.mubr.msk.f32.vlgmr.msra.gmra.mxu1 %vm148_vm2, %v169_v58 }
 0x1ef   :  { %v262_v11 = vpop.f32.mrf.mxu1 }
 0x1f0   :  { %v263_v12 = vadd.f32 %v463_v10, %v262_v11 }
 0x1f1   :  { %v535_v13 = vpop.f32.mrf.mxu1 }
 0x1f2   :  { %v266_v14 = vmax.f32 %v263_v12, 0.0 }
 0x1f4   :  { %v267_v15 = vsel %vm148_vm2, %v266_v14, 0.0 }
 0x1f5   :  { %v268_v16 = vrot.slane %v267_v15, 4 }
 0x1f7   :  { %v269_v17 = vadd.f32 %v268_v16, %v267_v15 }
 0x1f9   :  { %v270_v18 = vrot.slane %v269_v17, 2 }
 0x1fb   :  { %v271_v1 = vadd.f32 %v270_v18, %v269_v17 }
 0x1fd   :  { %v272_v19 = vrot.slane %v271_v1, 1 }
 0x1ff   :  { %v273_v20 = vadd.f32 %v272_v19, %v271_v1 }
 0x201   :  { %v274_v21 = vmul.f32 0.125, %v273_v20 }
 0x203   :  { %v275_v22 = vsub.f32 %v266_v14, %v274_v21 }
 0x205   :  { %v276_v23 = vmul.f32 %v275_v22, %v275_v22 }
 0x207   :  { %v277_v24 = vsel %vm148_vm2, %v276_v23, 0.0 }
 0x208   :  { %v278_v25 = vrot.slane %v277_v24, 4 }
 0x20a   :  { %v279_v26 = vadd.f32 %v278_v25, %v277_v24 }
 0x20c   :  { %v280_v27 = vrot.slane %v279_v26, 2 }
 0x20e   :  { %v281_v28 = vadd.f32 %v280_v27, %v279_v26 }
 0x210   :  { %v282_v29 = vrot.slane %v281_v28, 1 }
 0x212   :  { %v283_v30 = vadd.f32 %v282_v29, %v281_v28 }
 0x214   :  { %v284_v31 = vmul.f32 0.125, %v283_v30 }
 0x216   :  { %v285_v32 = vadd.f32 1e-05, %v284_v31 }
 0x218   :  { %578 = vrsqrt.f32 %v285_v32 }
 0x225   :  { %v579_v33 = vpop.eup %578 }
 0x226   :  { %v287_v34 = vmul.f32 %v579_v33, %v275_v22 }
 0x228   :  { %569 = vmatmul.mubr.msk.f32.vlgmr.msra.gmra.mxu0 %vm148_vm2, %v287_v34 }
 0x2e8   :  { %v428_v36 = vpop.f32.mrf.mxu0 }
 0x2e9   :  { %v429_v37 = vadd.f32 %v469_v35, %v428_v36 }
 0x2ea   :  { %v570_v38 = vpop.f32.mrf.mxu0 }
 0x2eb   :  { %432 = vmax.xlane.f32.xlu0 %v429_v37 }
 0x374   :  { %v433_v39 = vpop.xlane.xlu0 %432 }
 0x375   :  { %v434_v40 = vsub.f32 %v429_v37, %v433_v39 }
 0x377   :  { %v435_v41 = vmul.f32 1.442695, %v434_v40 }
 0x379   :  { %580 = vpow2.f32 %v435_v41 }
 0x386   :  { %v581_v42 = vpop.eup %580 }
 0x387   :  { %437 = vadd.xlane.f32.xlu0 %v581_v42 }
 0x410   :  { %v438_v43 = vpop.xlane.xlu0 %437 }
 0x411   :  { %582 = vlog2.f32 %v438_v43 }
 0x41e   :  { %v583_v44 = vpop.eup %582 }
 0x41f   :  { %v440_v45 = vmul.f32 0.6931472, %v583_v44 }
 0x421   :  { %v441_v46 = vsub.f32 %v434_v40, %v440_v45 }
 0x423   :  { %442 = vst [vmem:[#allocation2] sm:$0xff] %v441_v46 }
 0x424   :  { %595 = shalt.err (!%p592_p4)
}
 0x425   :  { %452 = dma.vmem_to_hbm [thread:$0]  %s450_s25, 128, %s806_s7, [#allocation3]  }
 0x426   :  { %604 = dma.done.wait [#allocation3], 128  }
 0x427   :  { %605 = vsyncadd [#allocation3], 4294967168 }
 0x428   :  { %456 = vsyncpa [#allocation3], 1 }

</bundles_post_ra>
